<compile_context>
chip_gen: v6e
topology: v6e:2x2x1
jax: 0.10.0
libtpu: 0.0.40
codegen_flags: <defaults>
</compile_context>

<pallas_src>
import jax
import jax.numpy as jnp
from jax.experimental import pallas as pl
from jax.experimental.pallas import tpu as pltpu

LANE = 128
ROW_ALIGN = 16        # bf16 sublane tile is (16, 128): keep batch tiles a multiple of 16
MAX_TILE_B = 2048     # rows per grid step; amortizes the ~0.35 us fixed per-step overhead


def _round_up(x, m):
    return (x + m - 1) // m * m


def _cdiv(a, b):
    return -(-a // b)


def decoder_kernel(zc_ref, w1_ref, b1_ref, w2_ref, b2_ref, wo_ref, bo_ref, out_ref):
    """Linear -> ReLU -> [Dropout=id] -> Linear -> ReLU -> [Dropout=id] -> Linear."""
    # ---- hidden layer 1 ----
    w1 = w1_ref[...]
    h = jnp.dot(zc_ref[...].astype(w1.dtype), w1, preferred_element_type=jnp.float32)
    h = jnp.maximum(h + b1_ref[...], 0.0)          # f32 epilogue (v5e-friendly)

    # ---- hidden layer 2 ----
    w2 = w2_ref[...]
    h = jnp.dot(h.astype(w2.dtype), w2, preferred_element_type=jnp.float32)
    h = jnp.maximum(h + b2_ref[...], 0.0)

    # ---- output layer (true x_dim width; no lane padding) ----
    wo = wo_ref[...]
    o = jnp.dot(h.astype(wo.dtype), wo, preferred_element_type=jnp.float32) + bo_ref[...]
    out_ref[...] = o.astype(out_ref.dtype)


def decoder_forward(z, c, prep, out_dtype=jnp.float32):
    """z: [B, latent], c: [B, c_dim] or None.  Returns reconstruction [B, x_dim]."""
    x_dim = prep["x_dim"]
    w1, b1 = prep["w1"], prep["b1"]
    w2, b2 = prep["w2"], prep["b2"]
    wo, bo = prep["wo"], prep["bo"]

    # Fuse the cat([z, c]) once in the wrapper -> single K=latent+c_dim matmul in-kernel.
    zc = z if c is None else jnp.concatenate([z, c], axis=-1)
    B, zc_dim = zc.shape
    assert zc_dim == w1.shape[0], (
        "z/c width does not match the prepared first-layer weight "
        "(conditional model called with c=None, or vice versa?)")

    h0p, h1p = w1.shape[1], w2.shape[1]

    # ---- batch tiling policy ----
    n_tiles = max(1, _cdiv(B, MAX_TILE_B))
    if n_tiles == 1 and B >= 2 * ROW_ALIGN:
        n_tiles = 2                                  # v7x: give both TensorCores a tile
    tile_b = _round_up(_cdiv(B, n_tiles), ROW_ALIGN)
    b_pad = n_tiles * tile_b
    if b_pad != B:
        zc = jnp.pad(zc, ((0, b_pad - B), (0, 0)))

    def tiled(ncols):
        return pl.BlockSpec((tile_b, ncols), lambda i: (i, 0))

    def resident(arr):
        # Full array, same block every grid step -> DMA'd once, stays VMEM-resident.
        return pl.BlockSpec(arr.shape, lambda i: (0, 0))

    ins = (zc, w1, b1, w2, b2, wo, bo)
    in_specs = [tiled(zc_dim),
                resident(w1), resident(b1),
                resident(w2), resident(b2),
                resident(wo), resident(bo)]

    # ---- VMEM budget: double-buffered in/out tiles + weights + activation temps ----
    out_itemsize = jnp.dtype(out_dtype).itemsize
    w_bytes = sum(int(a.size) * a.dtype.itemsize for a in (w1, b1, w2, b2, wo, bo))
    act_bytes = tile_b * max(h0p, h1p) * (4 + 4 + 2)     # f32 acts + bf16 cast temp
    vmem_limit = (2 * tile_b * zc_dim * 4 + 2 * tile_b * x_dim * out_itemsize
                  + 2 * w_bytes + act_bytes + (2 << 20))
    vmem_limit = int(min(64 << 20, max(4 << 20, vmem_limit)))

    flops = 2 * b_pad * (zc_dim * h0p + h0p * h1p + h1p * x_dim)
    bytes_accessed = b_pad * zc_dim * 4 + w_bytes + b_pad * x_dim * out_itemsize

    out = pl.pallas_call(
        decoder_kernel,
        out_shape=jax.ShapeDtypeStruct((b_pad, x_dim), out_dtype),
        grid=(n_tiles,),
        in_specs=in_specs,
        out_specs=tiled(x_dim),
        compiler_params=pltpu.CompilerParams(
            dimension_semantics=("parallel",),       # shards batch tiles across TCs (v7x)
            vmem_limit_bytes=vmem_limit,
        ),
        cost_estimate=pl.CostEstimate(
            flops=int(flops), transcendentals=0, bytes_accessed=int(bytes_accessed)),
    )(*ins)
    return out if b_pad == B else out[:B]


def make_params(key, x_dim, c_dim, hidden_sizes, latent_size):
    """PyTorch-equivalent f32 parameters; weights stored [in, out]."""
    assert len(hidden_sizes) == 2, "this script unrolls exactly 2 hidden layers"
    h0, h1 = hidden_sizes
    in0 = latent_size + c_dim
    k = jax.random.split(key, 6)

    def lin_init(kw, kb, fan_in, fan_out):
        bound = 1.0 / jnp.sqrt(jnp.float32(fan_in))
        w = jax.random.uniform(kw, (fan_in, fan_out), jnp.float32, -bound, bound)
        b = jax.random.uniform(kb, (1, fan_out), jnp.float32, -bound, bound)
        return w, b

    w1, b1 = lin_init(k[0], k[1], in0, h0)
    w2, b2 = lin_init(k[2], k[3], h0, h1)
    wo, bo = lin_init(k[4], k[5], h1, x_dim)
    return dict(w1=w1, b1=b1, w2=w2, b2=b2, wo=wo, bo=bo)


def prepare_params(params, compute_dtype=jnp.bfloat16):
    """Zero-pad hidden widths to multiples of 128 lanes and cast matmul weights to the
    MXU compute dtype.  Biases stay f32 (f32 VPU epilogue).  Zero padding is exact:
    padded hidden columns are ReLU(0)=0 and their outgoing weights are 0."""
    w1, b1 = params["w1"], params["b1"]
    w2, b2 = params["w2"], params["b2"]
    wo, bo = params["wo"], params["bo"]
    in0, h0 = w1.shape
    h1 = w2.shape[1]
    x_dim = wo.shape[1]
    h0p = _round_up(h0, LANE)
    h1p = _round_up(h1, LANE)

    def pad2(a, rows, cols):
        return jnp.zeros((rows, cols), a.dtype).at[:a.shape[0], :a.shape[1]].set(a)

    return dict(
        x_dim=x_dim,
        w1=pad2(w1, in0, h0p).astype(compute_dtype),
        b1=pad2(b1, 1, h0p),
        w2=pad2(w2, h0p, h1p).astype(compute_dtype),
        b2=pad2(b2, 1, h1p),
        wo=pad2(wo, h1p, x_dim).astype(compute_dtype),
        bo=bo,
    )


if __name__ == "__main__":
    # Small shapes consistent with the module's forward.
    B, x_dim, c_dim = 8, 16, 16
    hidden_sizes = (64, 64)
    latent_size = 16

    key = jax.random.PRNGKey(0)
    kz, kc, kp = jax.random.split(key, 3)
    z = jax.random.normal(kz, (B, latent_size), jnp.float32)
    c = jax.random.normal(kc, (B, c_dim), jnp.float32)
    params = make_params(kp, x_dim, c_dim, hidden_sizes, latent_size)
    prep = prepare_params(params)

    out = decoder_forward(z, c, prep)
    jax.block_until_ready(out)
    assert out.shape == (B, x_dim)

    # Reference mirroring the kernel's dtypes (bf16 matmul inputs, f32 accumulation).
    bf = jnp.bfloat16
    zc = jnp.concatenate([z, c], axis=-1)
    h = jnp.maximum(jnp.dot(zc.astype(bf), prep["w1"],
                            preferred_element_type=jnp.float32) + prep["b1"], 0.0)
    h = jnp.maximum(jnp.dot(h.astype(bf), prep["w2"],
                            preferred_element_type=jnp.float32) + prep["b2"], 0.0)
    ref_bf = jnp.dot(h.astype(bf), prep["wo"],
                     preferred_element_type=jnp.float32) + prep["bo"]
    assert jnp.allclose(out, ref_bf, atol=2e-3, rtol=2e-3), "kernel vs bf16 reference mismatch"

    # Looser semantic check against the full-f32 PyTorch-equivalent forward (eval mode).
    h32 = jnp.maximum(zc @ params["w1"] + params["b1"], 0.0)
    h32 = jnp.maximum(h32 @ params["w2"] + params["b2"], 0.0)
    ref32 = h32 @ params["wo"] + params["bo"]
    assert jnp.allclose(out, ref32, atol=5e-2, rtol=5e-2), "kernel vs f32 reference mismatch"

    # Exercise the multi-tile grid path (>=2 steps -> v7x megacore) with a ragged batch.
    B2 = 40
    kz2, kc2 = jax.random.split(jax.random.PRNGKey(1))
    z2 = jax.random.normal(kz2, (B2, latent_size), jnp.float32)
    c2 = jax.random.normal(kc2, (B2, c_dim), jnp.float32)
    out2 = decoder_forward(z2, c2, prep)
    jax.block_until_ready(out2)
    zc2 = jnp.concatenate([z2, c2], axis=-1)
    h2 = jnp.maximum(zc2 @ params["w1"] + params["b1"], 0.0)
    h2 = jnp.maximum(h2 @ params["w2"] + params["b2"], 0.0)
    ref2 = h2 @ params["wo"] + params["bo"]
    assert out2.shape == (B2, x_dim)
    assert jnp.allclose(out2, ref2, atol=5e-2, rtol=5e-2), "multi-tile kernel mismatch"

    # TODO(synk): training-mode Dropout (stateful PRNG mask) is intentionally omitted;
    # this kernel implements the eval-mode forward only.
    print("KERNEL_OK")
</pallas_src>

<mosaic_0001>
module attributes {stable_mosaic.version = 11 : i64} {
  func.func @decoder_kernel(%arg0: i32, %arg1: memref<16x32xf32, #tpu.memory_space<vmem>>, %arg2: memref<32x128xbf16, #tpu.memory_space<vmem>>, %arg3: memref<1x128xf32, #tpu.memory_space<vmem>>, %arg4: memref<128x128xbf16, #tpu.memory_space<vmem>>, %arg5: memref<1x128xf32, #tpu.memory_space<vmem>>, %arg6: memref<128x16xbf16, #tpu.memory_space<vmem>>, %arg7: memref<1x16xf32, #tpu.memory_space<vmem>>, %arg8: memref<16x16xf32, #tpu.memory_space<vmem>>) attributes {dimension_semantics = [#tpu.dimension_semantics<parallel>], iteration_bounds = array<i64: 1>, scalar_prefetch = 0 : i64, scratch_operands = 0 : i64, tpu.core_type = #tpu.core_type<tc>, window_params = [{transform_indices = @transform_0, window_bounds = array<i64: 16, 32>}, {pipeline_mode = #tpu.pipeline_mode<synchronous>, transform_indices = @transform_1, window_bounds = array<i64: 32, 128>}, {pipeline_mode = #tpu.pipeline_mode<synchronous>, transform_indices = @transform_2, window_bounds = array<i64: 1, 128>}, {pipeline_mode = #tpu.pipeline_mode<synchronous>, transform_indices = @transform_3, window_bounds = array<i64: 128, 128>}, {pipeline_mode = #tpu.pipeline_mode<synchronous>, transform_indices = @transform_4, window_bounds = array<i64: 1, 128>}, {pipeline_mode = #tpu.pipeline_mode<synchronous>, transform_indices = @transform_5, window_bounds = array<i64: 128, 16>}, {pipeline_mode = #tpu.pipeline_mode<synchronous>, transform_indices = @transform_6, window_bounds = array<i64: 1, 16>}, {transform_indices = @transform_7, window_bounds = array<i64: 16, 16>}]} {
    %c0 = arith.constant 0 : index
    %c0_0 = arith.constant 0 : index
    %0 = vector.load %arg2[%c0, %c0_0] : memref<32x128xbf16, #tpu.memory_space<vmem>>, vector<32x128xbf16>
    %c0_1 = arith.constant 0 : index
    %c0_2 = arith.constant 0 : index
    %1 = vector.load %arg1[%c0_1, %c0_2] : memref<16x32xf32, #tpu.memory_space<vmem>>, vector<16x32xf32>
    %2 = arith.truncf %1 : vector<16x32xf32> to vector<16x32xbf16>
    %cst = arith.constant dense<0.000000e+00> : vector<16x128xf32>
    %3 = tpu.matmul %2, %0, %cst {dimension_numbers = #tpu.dot_dimension_numbers<[1], [0], [0], [1], [0, 0, 1, 1], [], []>} : vector<16x32xbf16>, vector<32x128xbf16>, vector<16x128xf32> -> vector<16x128xf32>
    %c0_3 = arith.constant 0 : index
    %c0_4 = arith.constant 0 : index
    %4 = vector.load %arg3[%c0_3, %c0_4] : memref<1x128xf32, #tpu.memory_space<vmem>>, vector<1x128xf32>
    %5 = vector.broadcast %4 : vector<1x128xf32> to vector<16x128xf32>
    %6 = arith.addf %3, %5 : vector<16x128xf32>
    %cst_5 = arith.constant 0.000000e+00 : f32
    %7 = vector.broadcast %cst_5 : f32 to vector<16x128xf32>
    %8 = arith.maximumf %6, %7 : vector<16x128xf32>
    %c0_6 = arith.constant 0 : index
    %c0_7 = arith.constant 0 : index
    %9 = vector.load %arg4[%c0_6, %c0_7] : memref<128x128xbf16, #tpu.memory_space<vmem>>, vector<128x128xbf16>
    %10 = arith.truncf %8 : vector<16x128xf32> to vector<16x128xbf16>
    %cst_8 = arith.constant dense<0.000000e+00> : vector<16x128xf32>
    %11 = tpu.matmul %10, %9, %cst_8 {dimension_numbers = #tpu.dot_dimension_numbers<[1], [0], [0], [1], [0, 0, 1, 1], [], []>} : vector<16x128xbf16>, vector<128x128xbf16>, vector<16x128xf32> -> vector<16x128xf32>
    %c0_9 = arith.constant 0 : index
    %c0_10 = arith.constant 0 : index
    %12 = vector.load %arg5[%c0_9, %c0_10] : memref<1x128xf32, #tpu.memory_space<vmem>>, vector<1x128xf32>
    %13 = vector.broadcast %12 : vector<1x128xf32> to vector<16x128xf32>
    %14 = arith.addf %11, %13 : vector<16x128xf32>
    %cst_11 = arith.constant 0.000000e+00 : f32
    %15 = vector.broadcast %cst_11 : f32 to vector<16x128xf32>
    %16 = arith.maximumf %14, %15 : vector<16x128xf32>
    %c0_12 = arith.constant 0 : index
    %c0_13 = arith.constant 0 : index
    %17 = vector.load %arg6[%c0_12, %c0_13] : memref<128x16xbf16, #tpu.memory_space<vmem>>, vector<128x16xbf16>
    %18 = arith.truncf %16 : vector<16x128xf32> to vector<16x128xbf16>
    %cst_14 = arith.constant dense<0.000000e+00> : vector<16x16xf32>
    %19 = tpu.matmul %18, %17, %cst_14 {dimension_numbers = #tpu.dot_dimension_numbers<[1], [0], [0], [1], [0, 0, 1, 1], [], []>} : vector<16x128xbf16>, vector<128x16xbf16>, vector<16x16xf32> -> vector<16x16xf32>
    %c0_15 = arith.constant 0 : index
    %c0_16 = arith.constant 0 : index
    %20 = vector.load %arg7[%c0_15, %c0_16] : memref<1x16xf32, #tpu.memory_space<vmem>>, vector<1x16xf32>
    %21 = vector.broadcast %20 : vector<1x16xf32> to vector<16x16xf32>
    %22 = arith.addf %19, %21 : vector<16x16xf32>
    %c0_17 = arith.constant 0 : index
    %c0_18 = arith.constant 0 : index
    %23 = vector.load %arg8[%c0_17, %c0_18] : memref<16x16xf32, #tpu.memory_space<vmem>>, vector<16x16xf32>
    tpu.vector_store %arg8[%c0_17, %c0_18], %22 {strides = array<i32>} : memref<16x16xf32, #tpu.memory_space<vmem>>, vector<16x16xf32>,
    return
  }
  func.func @transform_0(%arg0: i32) -> (i32, i32) {
    %c0_i32 = arith.constant 0 : i32
    %c0_i32_0 = arith.constant 0 : i32
    return %arg0, %c0_i32 : i32, i32
  }
  func.func @transform_1(%arg0: i32) -> (i32, i32) {
    %c0_i32 = arith.constant 0 : i32
    %c0_i32_0 = arith.constant 0 : i32
    %c0_i32_1 = arith.constant 0 : i32
    return %c0_i32, %c0_i32_0 : i32, i32
  }
  func.func @transform_2(%arg0: i32) -> (i32, i32) {
    %c0_i32 = arith.constant 0 : i32
    %c0_i32_0 = arith.constant 0 : i32
    %c0_i32_1 = arith.constant 0 : i32
    return %c0_i32, %c0_i32_0 : i32, i32
  }
  func.func @transform_3(%arg0: i32) -> (i32, i32) {
    %c0_i32 = arith.constant 0 : i32
    %c0_i32_0 = arith.constant 0 : i32
    %c0_i32_1 = arith.constant 0 : i32
    return %c0_i32, %c0_i32_0 : i32, i32
  }
  func.func @transform_4(%arg0: i32) -> (i32, i32) {
    %c0_i32 = arith.constant 0 : i32
    %c0_i32_0 = arith.constant 0 : i32
    %c0_i32_1 = arith.constant 0 : i32
    return %c0_i32, %c0_i32_0 : i32, i32
  }
  func.func @transform_5(%arg0: i32) -> (i32, i32) {
    %c0_i32 = arith.constant 0 : i32
    %c0_i32_0 = arith.constant 0 : i32
    %c0_i32_1 = arith.constant 0 : i32
    return %c0_i32, %c0_i32_0 : i32, i32
  }
  func.func @transform_6(%arg0: i32) -> (i32, i32) {
    %c0_i32 = arith.constant 0 : i32
    %c0_i32_0 = arith.constant 0 : i32
    %c0_i32_1 = arith.constant 0 : i32
    return %c0_i32, %c0_i32_0 : i32, i32
  }
  func.func @transform_7(%arg0: i32) -> (i32, i32) {
    %c0_i32 = arith.constant 0 : i32
    %c0_i32_0 = arith.constant 0 : i32
    return %arg0, %c0_i32 : i32, i32
  }
}

</mosaic_0001>

<bundles_post_ra>
// kernel: tpu_custom_call.1
= control target key start
LH: loop header
LB: loop body
LE: loop exit
PB: predicated region body
PF: predicated region fallthrough
CT: control target
= control target key end

     0   :  { %12 = vsyncpa [#allocation3], 0  ;;  %s707_s0 = inlined_call_operand.hbm [shape: f32[16,32], index: 0, kind: input, shape index: {}]   ;;  %s708_s1 = inlined_call_operand.hbm [shape: bf16[32,128], index: 1, kind: input, shape index: {}]   ;;  %s709_s2 = inlined_call_operand.vmem [shape: f32[1,128], index: 2, kind: input, shape index: {}]   ;;  %s710_s3 = inlined_call_operand.vmem [shape: bf16[128,128], index: 3, kind: input, shape index: {}]   ;;  %s711_s4 = inlined_call_operand.vmem [shape: f32[1,128], index: 4, kind: input, shape index: {}]   ;;  %s712_s5 = inlined_call_operand.vmem [shape: bf16[128,16], index: 5, kind: input, shape index: {}]   ;;  %s713_s6 = inlined_call_operand.vmem [shape: f32[1,16], index: 6, kind: input, shape index: {}]   ;;  %s714_s7 = inlined_call_operand.hbm [shape: f32[16,16], index: 7, kind: output, shape index: {}]  }
   0x1   :  { %13 = vsyncpa [#allocation6], 0 }
   0x2   :  { %14 = vsyncpa [#allocation4], 0  ;;  %s562_s24 = smov [#allocation2]  }
   0x3   :  { %s20_s25 = sshll.u32 %s562_s24, 4  ;;  %s21_s25 = int_to_ptr.vmem [resolvable:$true] %s20_s25 }
   0x4   :  { %s504_s26 = scalar_lea.vmem %s21_s25, 256  ;;  %p509_p1 = scmp.lt.s32.totalorder %s21_s25, %s21_s25 }
   0x5   :  { %p505_p0 = scmp.ne.s32.totalorder %s21_s25, %s504_s26  ;;  %p510_p2 = scmp.lt.s32.totalorder %s504_s26, %s504_s26 }
   0x7   :  { %p511_p3 = por %p510_p2, %p509_p1 }
   0x9   :  { %p512_p4 = pnand %p511_p3, %p505_p0 }
   0xb   :  { %515 = shalt.err (!%p512_p4)
}
   0xc   :  { %s563_s27 = smov 128   ;;  %s564_s28 = smov 8  }
   0xd   :  { %26 = dma.hbm_to_vmem [thread:$0]  %s707_s0, 256, %s21_s25, [#allocation3], %s563_s27, %s563_s27, %s564_s28  }
   0xe   :  { %s565_s8 = smov [#allocation5]  }
   0xf   :  { %s32_s9 = sshll.u32 %s565_s8, 4  ;;  %s33_s9 = int_to_ptr.vmem [resolvable:$true] %s32_s9 }
  0x10   :  { %s524_s10 = scalar_lea.vmem %s33_s9, 256  ;;  %p529_p6 = scmp.lt.s32.totalorder %s33_s9, %s33_s9 }
  0x11   :  { %p525_p5 = scmp.ne.s32.totalorder %s33_s9, %s524_s10  ;;  %p530_p7 = scmp.lt.s32.totalorder %s524_s10, %s524_s10 }
  0x13   :  { %p531_p8 = por %p530_p7, %p529_p6 }
  0x15   :  { %p532_p9 = pnand %p531_p8, %p525_p5 }
  0x17   :  { %535 = shalt.err (!%p532_p9)
}
  0x18   :  { %s566_s11 = smov 64   ;;  %s567_s12 = smov 4  }
  0x19   :  { %38 = dma.hbm_to_vmem [thread:$0]  %s708_s1, 256, %s33_s9, [#allocation6], %s566_s11, %s566_s11, %s567_s12  }
  0x1a   :  { %556 = dma.done.wait [#allocation3], 256  }
  0x1b   :  { %557 = vsyncadd [#allocation3], 4294967040 }
  0x1c   :  { %558 = dma.done.wait [#allocation6], 256  }
  0x1d   :  { %559 = vsyncadd [#allocation6], 4294967040  ;;  %v568_v0 = vmov 0.0   ;;  %vm569_vm0 = vmmov 0   ;;  %v478_v1 = vld [vmem:[#allocation5 + $0x8] sm:$0xff]   ;;  %v479_v2 = vld [vmem:[#allocation5] sm:$0xff]  }
  0x1e   :  { %421 = vmatprep.subr.bf16.mxu0 %v568_v0  ;;  %425 = vmatprep.mubr.msk.bf16.mxu0 %vm569_vm0, %v568_v0  ;;  %v60_v3 = vld [vmem:[#allocation2] sm:$0xff]  ;;  %v61_v4 = vld [vmem:[#allocation2 + $0x8] sm:$0xff]  ;;  %v480_v5 = vld [vmem:[%s710_s3 + $0x38] sm:$0xff]   ;;  %vm82_vm1 = vcmask 261120   ;;  %vm357_vm2 = vcmask 130048  }
  0x1f   :  { %429 = vmatprep.subr.bf16.mxu1 %v568_v0  ;;  %445 = vmatprep.mubr.msk.bf16.mxu1 %vm569_vm0, %v568_v0  ;;  %v62_v6 = vpack.c.bf16 %v61_v4, %v60_v3  ;;  %v481_v7 = vld [vmem:[%s710_s3 + $0x30] sm:$0xff]   ;;  %v482_v8 = vld [vmem:[%s710_s3 + $0x28] sm:$0xff]   ;;  %v483_v9 = vld [vmem:[%s710_s3 + $0x20] sm:$0xff]  }
  0x20   :  { %422 = vmatpush3.bf16.msra.mxu0 %v478_v1  ;;  %430 = vmatpush3.bf16.msra.mxu1 %v480_v5  ;;  %v484_v10 = vld [vmem:[%s710_s3 + $0x18] sm:$0xff]   ;;  %v485_v11 = vld [vmem:[%s710_s3 + $0x10] sm:$0xff]   ;;  %v486_v12 = vld [vmem:[%s710_s3 + $0x8] sm:$0xff]  }
  0x21   :  { %423 = vmatprep.subr.bf16.mxu0 %v568_v0  ;;  %431 = vmatprep.subr.bf16.mxu1 %v568_v0  ;;  %v487_v13 = vld [vmem:[%s710_s3] sm:$0xff]   ;;  %v488_v14 = vld [vmem:[%s712_s5 + $0x38] sm:$0xff]   ;;  %v489_v15 = vld [vmem:[%s712_s5 + $0x30] sm:$0xff]  }
  0x22   :  { %v490_v16 = vld [vmem:[%s712_s5 + $0x28] sm:$0xff]   ;;  %v491_v17 = vld [vmem:[%s712_s5 + $0x20] sm:$0xff]   ;;  %v492_v18 = vld [vmem:[%s712_s5 + $0x18] sm:$0xff]  }
  0x23   :  { %v378_v19 = vld [vmem:[%s709_s2] ss:$0 sm:$0xff]  ;;  %v493_v29 = vld [vmem:[%s712_s5 + $0x10] sm:$0xff]   ;;  %v494_v30 = vld [vmem:[%s712_s5 + $0x8] sm:$0xff]  }
  0x24   :  { %424 = vmatpush3.bf16.msra.mxu0 %v479_v2  ;;  %432 = vmatpush3.bf16.msra.mxu1 %v481_v7  ;;  %v495_v31 = vld [vmem:[%s712_s5] sm:$0xff]   ;;  %s570_s5 = smov [#allocation7]  }
  0x25   :  { %449 = vmatprep.subr.bf16.mxu0 %v568_v0  ;;  %433 = vmatprep.subr.bf16.mxu1 %v568_v0  ;;  %v382_v32 = vld [vmem:[%s711_s4] ss:$0 sm:$0xff]  ;;  %s365_s4 = sshll.u32 %s570_s5, 4  ;;  %s366_s4 = int_to_ptr.vmem [resolvable:$true] %s365_s4 }
  0x26   :  { %v391_v42 = vld [vmem:[%s713_s6] ss:$0 sm:$0xff]  ;;  %s536_s26 = scalar_lea.vmem %s366_s4, 256  ;;  %p541_p11 = scmp.lt.s32.totalorder %s366_s4, %s366_s4 }
  0x27   :  { %426 = vmatmul.mubr.msk.bf16.vlgmr.msra.gmra.mxu0 %vm82_vm1, %v62_v6  ;;  %p537_p10 = scmp.ne.s32.totalorder %s366_s4, %s536_s26  ;;  %p542_p12 = scmp.lt.s32.totalorder %s536_s26, %s536_s26 }
  0x28   :  { %465 = vmatprep.mubr.msk.bf16.mxu0 %vm569_vm0, %v568_v0  ;;  %434 = vmatpush3.bf16.msra.mxu1 %v482_v8 }
  0x29   :  { %435 = vmatprep.subr.bf16.mxu1 %v568_v0  ;;  %450 = vmatpush3.bf16.msra.mxu0 %v488_v14  ;;  %p543_p13 = por %p542_p12, %p541_p11 }
  0x2a   :  { %451 = vmatprep.subr.bf16.mxu0 %v568_v0 }
  0x2b   :  { %p544_p0 = pnand %p543_p13, %p537_p10 }
  0x2c   :  { %436 = vmatpush3.bf16.msra.mxu1 %v483_v9 }
  0x2d   :  { %437 = vmatprep.subr.bf16.mxu1 %v568_v0  ;;  %452 = vmatpush3.bf16.msra.mxu0 %v489_v15 }
  0x2e   :  { %453 = vmatprep.subr.bf16.mxu0 %v568_v0 }
  0x30   :  { %438 = vmatpush3.bf16.msra.mxu1 %v484_v10 }
  0x31   :  { %439 = vmatprep.subr.bf16.mxu1 %v568_v0  ;;  %454 = vmatpush3.bf16.msra.mxu0 %v490_v16 }
  0x32   :  { %455 = vmatprep.subr.bf16.mxu0 %v568_v0 }
  0x34   :  { %440 = vmatpush3.bf16.msra.mxu1 %v485_v11 }
  0x35   :  { %441 = vmatprep.subr.bf16.mxu1 %v568_v0  ;;  %456 = vmatpush3.bf16.msra.mxu0 %v491_v17 }
  0x36   :  { %457 = vmatprep.subr.bf16.mxu0 %v568_v0 }
  0x38   :  { %442 = vmatpush3.bf16.msra.mxu1 %v486_v12 }
  0x39   :  { %443 = vmatprep.subr.bf16.mxu1 %v568_v0  ;;  %458 = vmatpush3.bf16.msra.mxu0 %v492_v18 }
  0x3a   :  { %459 = vmatprep.subr.bf16.mxu0 %v568_v0 }
  0x3c   :  { %444 = vmatpush3.bf16.msra.mxu1 %v487_v13 }
  0x3d   :  { %460 = vmatpush3.bf16.msra.mxu0 %v493_v29 }
  0x3e   :  { %461 = vmatprep.subr.bf16.mxu0 %v568_v0 }
  0x41   :  { %462 = vmatpush3.bf16.msra.mxu0 %v494_v30 }
  0x42   :  { %463 = vmatprep.subr.bf16.mxu0 %v568_v0 }
  0x45   :  { %464 = vmatpush3.bf16.msra.mxu0 %v495_v31 }
  0xe7   :  { %v120_v20 = vpop.f32.mrf.mxu0 }
  0xe8   :  { %v121_v22 = vadd.f32 %v378_v19, %v120_v20 }
  0xe9   :  { %v427_v21 = vpop.f32.mrf.mxu0 }
  0xea   :  { %v127_v26 = vmax.f32 %v121_v22, 0.0 }
  0xeb   :  { %v123_v23 = vpop.f32.mrf.mxu0 }
  0xec   :  { %v124_v24 = vadd.f32 %v378_v19, %v123_v23 }
  0xed   :  { %v428_v25 = vpop.f32.mrf.mxu0 }
  0xee   :  { %v128_v27 = vmax.f32 %v124_v24, 0.0 }
  0xf0   :  { %v145_v28 = vpack.c.bf16 %v128_v27, %v127_v26 }
  0xf2   :  { %446 = vmatmul.mubr.bf16.vlgmr.msra.gmra.mxu1 %v145_v28 }
 0x1b2   :  { %v235_v33 = vpop.f32.mrf.mxu1 }
 0x1b3   :  { %v236_v35 = vadd.f32 %v382_v32, %v235_v33 }
 0x1b4   :  { %v447_v34 = vpop.f32.mrf.mxu1 }
 0x1b5   :  { %v242_v39 = vmax.f32 %v236_v35, 0.0 }
 0x1b6   :  { %v238_v36 = vpop.f32.mrf.mxu1 }
 0x1b7   :  { %v239_v37 = vadd.f32 %v382_v32, %v238_v36 }
 0x1b8   :  { %v448_v38 = vpop.f32.mrf.mxu1 }
 0x1b9   :  { %v243_v40 = vmax.f32 %v239_v37, 0.0 }
 0x1bb   :  { %v260_v41 = vpack.c.bf16 %v243_v40, %v242_v39 }
 0x1bd   :  { %466 = vmatmul.mubr.bf16.vlgmr.msra.gmra.mxu0 %v260_v41 }
 0x27d   :  { %v350_v43 = vpop.f32.mrf.mxu0 }
 0x27e   :  { %v351_v44 = vadd.f32 %v391_v42, %v350_v43 }
 0x27f   :  { %v467_v45 = vpop.f32.mrf.mxu0 }
 0x280   :  { %358 = vst.msk [vmem:[#allocation7] sm:$0xff] %vm357_vm2, %v351_v44 }
 0x281   :  { %v353_v46 = vpop.f32.mrf.mxu0 }
 0x282   :  { %v354_v47 = vadd.f32 %v391_v42, %v353_v46 }
 0x283   :  { %v468_v48 = vpop.f32.mrf.mxu0 }
 0x284   :  { %359 = vst.msk [vmem:[#allocation7 + $0x8] sm:$0xff] %vm357_vm2, %v354_v47 }
 0x285   :  { %547 = shalt.err (!%p544_p0)
}
 0x286   :  { %371 = dma.vmem_to_hbm [thread:$0]  %s366_s4, 256, %s714_s7, [#allocation4], %s563_s27, %s563_s27, %s564_s28  }
 0x287   :  { %560 = dma.done.wait [#allocation4], 256  }
 0x288   :  { %561 = vsyncadd [#allocation4], 4294967040 }
 0x289   :  { %375 = vsyncpa [#allocation3], 1 }
 0x28a   :  { %376 = vsyncpa [#allocation6], 1 }
 0x28b   :  { %377 = vsyncpa [#allocation4], 1 }

</bundles_post_ra>
